<compile_context>
chip_gen: v6e
topology: v6e:2x2x1
jax: 0.10.0
libtpu: 0.0.40
codegen_flags: <defaults>
</compile_context>

<pallas_src>
import jax
import jax.numpy as jnp
from jax.experimental import pallas as pl
from jax.experimental.pallas import tpu as pltpu

GN_EPS = 1e-5               # nn.GroupNorm default eps
VMEM_LIMIT_BYTES = 32 << 20  # safe on v5e/v6e/v7x (128 / 128 / 64 MiB physical)


# -----------------------------------------------------------------------------
# Stage 1: attention path (runs once per call, batched over N).
#   inputs : avg (N,C) f32, w_atten^T (C,C) f32, group-mean matrix (C,C) f32,
#            gamma (1,C), beta (1,C), w_conv (C_out,C) f32
#   output : attention-scaled conv weights  w_scaled (N, C_out, C)
# Negligible work (O(N*C^2)); kept as a single unblocked Pallas call.
# -----------------------------------------------------------------------------
def atten_fold_kernel(avg_ref, wa_t_ref, gmat_ref, gamma_ref, beta_ref,
                      wconv_ref, o_ref):
    avg = avg_ref[...]                                            # (N, C)
    # conv_atten (1x1, no bias) on the pooled features, batched over N.
    pre = jnp.dot(avg, wa_t_ref[...],
                  preferred_element_type=jnp.float32)             # (N, C)

    # GroupNorm(32, C) on the (N, C, 1, 1) tensor.  Per-group biased mean/var
    # via a symmetric group-averaging matrix (lane-friendly; tiny cost).
    g_mean = jnp.dot(pre, gmat_ref[...],
                     preferred_element_type=jnp.float32)          # (N, C)
    centered = pre - g_mean
    g_var = jnp.dot(centered * centered, gmat_ref[...],
                    preferred_element_type=jnp.float32)           # (N, C) >= 0
    normed = centered * jax.lax.rsqrt(g_var + GN_EPS)
    atten = jax.nn.sigmoid(normed * gamma_ref[...] + beta_ref[...])  # (N, C)

    # Fold (x + x*atten) into the final conv weight:
    #   out[n] = w_conv @ (x[n] * (1+atten[n])) = (w_conv * (1+atten[n])) @ x[n]
    scale = 1.0 + atten                                           # (N, C)
    o_ref[...] = (wconv_ref[...][None, :, :] * scale[:, None, :]
                  ).astype(o_ref.dtype)                           # (N, C_out, C)


# -----------------------------------------------------------------------------
# Stage 2: tiled 1x1 conv  out[n, :, t] = w_scaled[n] @ x[n, :, t]
# -----------------------------------------------------------------------------
def _pick_tile(hw, c_in, c_out, x_bytes, out_bytes, w_bytes,
               *, n_x_buffers=3, vmem_budget=16 << 20, max_tile=4096):
    """VMEM-budget-derived lane-dense spatial tile (multiple of 128)."""
    if hw <= 128:
        return int(hw)                       # full extent (tiny level)
    resident_w = 2 * c_out * c_in * w_bytes  # (C_out, C) weight, double-buffered
    per_lane = n_x_buffers * c_in * x_bytes + 2 * c_out * out_bytes
    t = (vmem_budget - resident_w) // per_lane
    t = min(t, hw, max_tile)
    t = max(128, (t // 128) * 128)
    return int(t)


def _stage2_pallas(w_scaled, x_flat, *, tile_hw, out_dtype, compute_dtype,
                   x_buffers):
    N, C_out, C = w_scaled.shape
    HW = x_flat.shape[2]
    n_tiles = pl.cdiv(HW, tile_hw)

    x_bytes = jnp.dtype(x_flat.dtype).itemsize
    o_bytes = jnp.dtype(out_dtype).itemsize
    w_bytes = jnp.dtype(w_scaled.dtype).itemsize
    cost = pl.CostEstimate(
        flops=2 * N * C * C_out * HW,
        bytes_accessed=N * HW * (C * x_bytes + C_out * o_bytes)
                       + N * C_out * C * w_bytes,
        transcendentals=0)

    def kernel(w_ref, x_ref, o_ref):
        x = x_ref[0]                      # (C, tile_hw), native dtype
        if x.dtype != compute_dtype:
            x = x.astype(compute_dtype)   # in-kernel cast: no extra HBM pass
        o_ref[0] = jnp.dot(w_ref[0], x,
                           preferred_element_type=jnp.float32).astype(o_ref.dtype)

    x_idx = lambda n, t: (n, 0, t)
    if x_buffers is not None and x_buffers != 2:
        # Triple-buffer the x stream: per-tile compute is short vs the tile DMA.
        x_spec = pl.BlockSpec((1, C, tile_hw), x_idx,
                              pipeline_mode=pl.Buffered(x_buffers))
    else:
        x_spec = pl.BlockSpec((1, C, tile_hw), x_idx)

    return pl.pallas_call(
        kernel,
        out_shape=jax.ShapeDtypeStruct((N, C_out, HW), out_dtype),
        grid_spec=pltpu.PrefetchScalarGridSpec(
            num_scalar_prefetch=0,
            grid=(N, n_tiles),
            in_specs=[
                # w_scaled: constant block index over t -> VMEM-resident across
                # the spatial loop (one DMA per batch element).
                pl.BlockSpec((1, C_out, C), lambda n, t: (n, 0, 0)),
                # x: lane-dense spatial tile, multi-buffered by the pipeline.
                x_spec,
            ],
            out_specs=pl.BlockSpec((1, C_out, tile_hw), lambda n, t: (n, 0, t)),
        ),
        compiler_params=pltpu.CompilerParams(
            dimension_semantics=("parallel", "parallel"),
            vmem_limit_bytes=VMEM_LIMIT_BYTES),
        cost_estimate=cost,
    )(w_scaled, x_flat)


def feature_selection_module(x_nchw, w_atten, gn_gamma, gn_beta, w_conv,
                             num_groups=32, compute_dtype=jnp.bfloat16,
                             out_dtype=None, tile_hw=None,
                             small_hw_threshold=512, x_buffers=3):
    """x_nchw: (N, C, H, W).  Returns (N, C_out, H, W) in out_dtype."""
    N, C, H, W = x_nchw.shape
    C_out = w_conv.shape[0]
    HW = H * W
    assert C % num_groups == 0
    out_dtype = compute_dtype if out_dtype is None else out_dtype

    x_flat = x_nchw.reshape(N, C, HW)
    # Global average pool: f32 accumulation directly on the native-dtype array
    # (no f32 materialization of x; fuses into a single XLA reduction).
    avg = jnp.mean(x_flat, axis=2, dtype=jnp.float32)             # (N, C)

    wa_t = w_atten.reshape(C, C).astype(jnp.float32).T            # (C_in, C_out)
    wc = w_conv.reshape(C_out, C).astype(jnp.float32)
    gamma = gn_gamma.reshape(1, C).astype(jnp.float32)
    beta = gn_beta.reshape(1, C).astype(jnp.float32)

    # Symmetric group-averaging matrix: M[c,c'] = 1/(C/G) if same group else 0.
    cpg = C // num_groups
    ids = jnp.arange(C) // cpg
    group_mat = (ids[:, None] == ids[None, :]).astype(jnp.float32) / cpg

    # --- Stage 1: attention -> per-batch scaled conv weights (once for all N)
    w_scaled = pl.pallas_call(
        atten_fold_kernel,
        out_shape=jax.ShapeDtypeStruct((N, C_out, C), compute_dtype),
    )(avg, wa_t, group_mat, gamma, beta, wc)

    # --- Tiny pyramid levels: lane-sparse stores + per-step overhead dominate;
    #     let XLA handle the matmul directly.
    if HW < small_hw_threshold:
        out = jnp.einsum('noc,nct->not', w_scaled,
                         x_flat.astype(compute_dtype),
                         preferred_element_type=jnp.float32).astype(out_dtype)
        return out.reshape(N, C_out, H, W)

    # --- Stage 2: tiled matmul over (N, HW) with x read in its native dtype.
    x_bytes = jnp.dtype(x_flat.dtype).itemsize
    o_bytes = jnp.dtype(out_dtype).itemsize
    w_bytes = jnp.dtype(compute_dtype).itemsize
    if tile_hw is None:
        tile_hw = _pick_tile(HW, C, C_out, x_bytes, o_bytes, w_bytes,
                             n_x_buffers=(x_buffers or 2))

    try:
        out = _stage2_pallas(w_scaled, x_flat, tile_hw=tile_hw,
                             out_dtype=out_dtype, compute_dtype=compute_dtype,
                             x_buffers=x_buffers)
    except Exception:
        if x_buffers == 2 or x_buffers is None:
            raise
        # Fallback: default double buffering (known-good path) if the
        # triple-buffer request is rejected by this jax/Mosaic version.
        out = _stage2_pallas(w_scaled, x_flat, tile_hw=tile_hw,
                             out_dtype=out_dtype, compute_dtype=compute_dtype,
                             x_buffers=2)
    return out.reshape(N, C_out, H, W)


# -----------------------------------------------------------------------------
# Pure-JAX reference mirroring the PyTorch forward (NCHW, f32).
# -----------------------------------------------------------------------------
def feature_selection_module_ref(x, w_atten, gn_gamma, gn_beta, w_conv,
                                 num_groups=32):
    N, C, H, W = x.shape
    C_out = w_conv.shape[0]
    avg = jnp.mean(x, axis=(2, 3))                                  # (N, C)
    pre = avg @ w_atten.reshape(C, C).T                             # (N, C)
    pg = pre.reshape(N, num_groups, C // num_groups)
    mean = jnp.mean(pg, axis=2, keepdims=True)
    var = jnp.mean((pg - mean) ** 2, axis=2, keepdims=True)
    normed = ((pg - mean) / jnp.sqrt(var + GN_EPS)).reshape(N, C)
    atten = jax.nn.sigmoid(normed * gn_gamma[None, :] + gn_beta[None, :])
    x2 = x * (1.0 + atten[:, :, None, None])
    out = jnp.einsum('oc,nchw->nohw', w_conv.reshape(C_out, C), x2)
    return out


if __name__ == "__main__":
    # Small but valid shapes: GroupNorm uses 32 groups, so C=64.
    N, C, C_out = 2, 64, 32
    key = jax.random.PRNGKey(0)
    k0, k1, k2, k3, k4 = jax.random.split(key, 5)

    # conv_atten.weight: (C, C, 1, 1); conv.weight: (C_out, C, 1, 1); bias-free
    w_atten = jax.random.normal(k1, (C, C, 1, 1), dtype=jnp.float32) * 0.1
    w_conv = jax.random.normal(k2, (C_out, C, 1, 1), dtype=jnp.float32) * 0.1
    gn_gamma = 1.0 + 0.1 * jax.random.normal(k3, (C,), dtype=jnp.float32)
    gn_beta = 0.1 * jax.random.normal(k4, (C,), dtype=jnp.float32)

    # --- Pallas path: HW = 24*24 = 576 (NOT a multiple of 128 -> exercises
    #     the partial last tile / masked writeback).
    H = W = 24
    x = jax.random.normal(k0, (N, C, H, W), dtype=jnp.float32)
    ref = feature_selection_module_ref(x, w_atten, gn_gamma, gn_beta, w_conv)

    # (1) f32 path, explicit 128 tile: exact check incl. partial-tile store.
    out_f32 = feature_selection_module(
        x, w_atten, gn_gamma, gn_beta, w_conv,
        compute_dtype=jnp.float32, tile_hw=128, small_hw_threshold=0)
    out_f32 = jax.block_until_ready(out_f32)
    assert out_f32.shape == (N, C_out, H, W)
    assert jnp.allclose(out_f32, ref, atol=1e-4, rtol=1e-4), \
        f"f32 max abs err {jnp.max(jnp.abs(out_f32 - ref))}"

    # (2) default (performance) configuration: bf16 compute with in-kernel
    #     cast of native-f32 x, budget-derived tile, f32 MXU accumulation.
    out_bf16 = feature_selection_module(x, w_atten, gn_gamma, gn_beta, w_conv)
    out_bf16 = jax.block_until_ready(out_bf16).astype(jnp.float32)
    assert out_bf16.shape == (N, C_out, H, W)
    assert jnp.allclose(out_bf16, ref, atol=5e-2, rtol=5e-2), \
        f"bf16 max abs err {jnp.max(jnp.abs(out_bf16 - ref))}"

    # (3) tiny pyramid level (HW = 256 < 512): XLA einsum fallback path.
    Hs = Ws = 16
    xs = jax.random.normal(k0, (N, C, Hs, Ws), dtype=jnp.float32)
    ref_s = feature_selection_module_ref(xs, w_atten, gn_gamma, gn_beta, w_conv)
    out_s = feature_selection_module(
        xs, w_atten, gn_gamma, gn_beta, w_conv, compute_dtype=jnp.float32)
    out_s = jax.block_until_ready(out_s)
    assert out_s.shape == (N, C_out, Hs, Ws)
    assert jnp.allclose(out_s, ref_s, atol=1e-4, rtol=1e-4), \
        f"small-HW max abs err {jnp.max(jnp.abs(out_s - ref_s))}"

    print("KERNEL_OK")
</pallas_src>

<mosaic_0001>
module attributes {stable_mosaic.version = 11 : i64} {
  func.func @atten_fold_kernel(%arg0: memref<2x64xf32, #tpu.memory_space<vmem>>, %arg1: memref<64x64xf32, #tpu.memory_space<vmem>>, %arg2: memref<64x64xf32, #tpu.memory_space<vmem>>, %arg3: memref<1x64xf32, #tpu.memory_space<vmem>>, %arg4: memref<1x64xf32, #tpu.memory_space<vmem>>, %arg5: memref<32x64xf32, #tpu.memory_space<vmem>>, %arg6: memref<2x32x64xf32, #tpu.memory_space<vmem>>) attributes {dimension_semantics = [], scalar_prefetch = 0 : i64, scratch_operands = 0 : i64, tpu.core_type = #tpu.core_type<tc>} {
    %c0 = arith.constant 0 : index
    %c0_0 = arith.constant 0 : index
    %0 = vector.load %arg0[%c0, %c0_0] : memref<2x64xf32, #tpu.memory_space<vmem>>, vector<2x64xf32>
    %c0_1 = arith.constant 0 : index
    %c0_2 = arith.constant 0 : index
    %1 = vector.load %arg1[%c0_1, %c0_2] : memref<64x64xf32, #tpu.memory_space<vmem>>, vector<64x64xf32>
    %cst = arith.constant dense<0.000000e+00> : vector<2x64xf32>
    %2 = tpu.matmul %0, %1, %cst {dimension_numbers = #tpu.dot_dimension_numbers<[1], [0], [0], [1], [0, 0, 1, 1], [], []>} : vector<2x64xf32>, vector<64x64xf32>, vector<2x64xf32> -> vector<2x64xf32>
    %c0_3 = arith.constant 0 : index
    %c0_4 = arith.constant 0 : index
    %3 = vector.load %arg2[%c0_3, %c0_4] : memref<64x64xf32, #tpu.memory_space<vmem>>, vector<64x64xf32>
    %cst_5 = arith.constant dense<0.000000e+00> : vector<2x64xf32>
    %4 = tpu.matmul %2, %3, %cst_5 {dimension_numbers = #tpu.dot_dimension_numbers<[1], [0], [0], [1], [0, 0, 1, 1], [], []>} : vector<2x64xf32>, vector<64x64xf32>, vector<2x64xf32> -> vector<2x64xf32>
    %5 = arith.subf %2, %4 : vector<2x64xf32>
    %6 = arith.mulf %5, %5 : vector<2x64xf32>
    %c0_6 = arith.constant 0 : index
    %c0_7 = arith.constant 0 : index
    %7 = vector.load %arg2[%c0_6, %c0_7] : memref<64x64xf32, #tpu.memory_space<vmem>>, vector<64x64xf32>
    %cst_8 = arith.constant dense<0.000000e+00> : vector<2x64xf32>
    %8 = tpu.matmul %6, %7, %cst_8 {dimension_numbers = #tpu.dot_dimension_numbers<[1], [0], [0], [1], [0, 0, 1, 1], [], []>} : vector<2x64xf32>, vector<64x64xf32>, vector<2x64xf32> -> vector<2x64xf32>
    %cst_9 = arith.constant 9.99999974E-6 : f32
    %9 = vector.broadcast %cst_9 : f32 to vector<2x64xf32>
    %10 = arith.addf %8, %9 : vector<2x64xf32>
    %11 = math.rsqrt %10 : vector<2x64xf32>
    %12 = arith.mulf %5, %11 : vector<2x64xf32>
    %c0_10 = arith.constant 0 : index
    %c0_11 = arith.constant 0 : index
    %13 = vector.load %arg3[%c0_10, %c0_11] : memref<1x64xf32, #tpu.memory_space<vmem>>, vector<1x64xf32>
    %14 = vector.broadcast %13 : vector<1x64xf32> to vector<2x64xf32>
    %15 = arith.mulf %12, %14 : vector<2x64xf32>
    %c0_12 = arith.constant 0 : index
    %c0_13 = arith.constant 0 : index
    %16 = vector.load %arg4[%c0_12, %c0_13] : memref<1x64xf32, #tpu.memory_space<vmem>>, vector<1x64xf32>
    %17 = vector.broadcast %16 : vector<1x64xf32> to vector<2x64xf32>
    %18 = arith.addf %15, %17 : vector<2x64xf32>
    %19 = arith.negf %18 : vector<2x64xf32>
    %20 = math.exp %19 : vector<2x64xf32>
    %cst_14 = arith.constant 1.000000e+00 : f32
    %21 = vector.broadcast %cst_14 : f32 to vector<2x64xf32>
    %22 = arith.addf %21, %20 : vector<2x64xf32>
    %23 = arith.divf %21, %22 : vector<2x64xf32>
    %cst_15 = arith.constant 1.000000e+00 : f32
    %24 = vector.broadcast %cst_15 : f32 to vector<2x64xf32>
    %25 = arith.addf %24, %23 : vector<2x64xf32>
    %c0_16 = arith.constant 0 : index
    %c0_17 = arith.constant 0 : index
    %26 = vector.load %arg5[%c0_16, %c0_17] : memref<32x64xf32, #tpu.memory_space<vmem>>, vector<32x64xf32>
    %27 = vector.shape_cast %26 : vector<32x64xf32> to vector<1x32x64xf32>
    %28 = vector.shape_cast %25 : vector<2x64xf32> to vector<2x1x64xf32>
    %29 = vector.broadcast %27 : vector<1x32x64xf32> to vector<2x32x64xf32>
    %30 = vector.broadcast %28 : vector<2x1x64xf32> to vector<2x32x64xf32>
    %31 = arith.mulf %29, %30 : vector<2x32x64xf32>
    %c0_18 = arith.constant 0 : index
    %c0_19 = arith.constant 0 : index
    %c0_20 = arith.constant 0 : index
    %32 = vector.load %arg6[%c0_18, %c0_19, %c0_20] : memref<2x32x64xf32, #tpu.memory_space<vmem>>, vector<2x32x64xf32>
    tpu.vector_store %arg6[%c0_18, %c0_19, %c0_20], %31 {strides = array<i32>} : memref<2x32x64xf32, #tpu.memory_space<vmem>>, vector<2x32x64xf32>,
    return
  }
}

</mosaic_0001>

<bundles_post_ra>
// kernel: tpu_custom_call.1
= control target key start
LH: loop header
LB: loop body
LE: loop exit
PB: predicated region body
PF: predicated region fallthrough
CT: control target
= control target key end

     0   :  { %11 = vsyncpa [#allocation3], 0  ;;  %s746_s0 = inlined_call_operand.hbm [shape: f32[2,64], index: 0, kind: input, shape index: {}]   ;;  %s747_s1 = inlined_call_operand.hbm [shape: f32[64,64], index: 1, kind: input, shape index: {}]   ;;  %s748_s2 = inlined_call_operand.hbm [shape: f32[64,64], index: 2, kind: input, shape index: {}]   ;;  %s749_s3 = inlined_call_operand.vmem [shape: f32[1,64], index: 3, kind: input, shape index: {}]   ;;  %s750_s4 = inlined_call_operand.vmem [shape: f32[1,64], index: 4, kind: input, shape index: {}]   ;;  %s751_s5 = inlined_call_operand.hbm [shape: f32[32,64], index: 5, kind: input, shape index: {}]   ;;  %s752_s6 = inlined_call_operand.hbm [shape: f32[2,32,64], index: 6, kind: output, shape index: {}]  }
   0x1   :  { %12 = vsyncpa [#allocation6], 0 }
   0x2   :  { %13 = vsyncpa [#allocation9], 0 }
   0x3   :  { %14 = vsyncpa [#allocation4], 0  ;;  %s627_s21 = smov [#allocation5]  }
   0x4   :  { %s30_s22 = sshll.u32 %s627_s21, 4  ;;  %s31_s22 = int_to_ptr.vmem [resolvable:$true] %s30_s22 }
   0x5   :  { %s527_s23 = scalar_lea.vmem %s31_s22, 1024  ;;  %p532_p1 = scmp.lt.s32.totalorder %s31_s22, %s31_s22 }
   0x6   :  { %p528_p0 = scmp.ne.s32.totalorder %s31_s22, %s527_s23  ;;  %p533_p2 = scmp.lt.s32.totalorder %s527_s23, %s527_s23 }
   0x8   :  { %p534_p3 = por %p533_p2, %p532_p1 }
   0xa   :  { %p535_p4 = pnand %p534_p3, %p528_p0 }
   0xc   :  { %538 = shalt.err (!%p535_p4)
}
   0xd   :  { %s628_s24 = smov 128   ;;  %s629_s25 = smov 8  }
   0xe   :  { %36 = dma.hbm_to_vmem [thread:$0]  %s747_s1, 1024, %s31_s22, [#allocation6], %s628_s24, %s628_s24, %s629_s25  }
   0xf   :  { %s630_s28 = smov [#allocation2]   ;;  %s631_s30 = smov [#allocation7]  }
  0x10   :  { %s21_s29 = sshll.u32 %s630_s28, 4  ;;  %s42_s7 = sshll.u32 %s631_s30, 4  ;;  %s22_s29 = int_to_ptr.vmem [resolvable:$true] %s21_s29  ;;  %s43_s7 = int_to_ptr.vmem [resolvable:$true] %s42_s7 }
  0x11   :  { %s547_s8 = scalar_lea.vmem %s22_s29, 32  ;;  %p552_p6 = scmp.lt.s32.totalorder %s22_s29, %s22_s29 }
  0x12   :  { %p548_p5 = scmp.ne.s32.totalorder %s22_s29, %s547_s8  ;;  %p553_p7 = scmp.lt.s32.totalorder %s547_s8, %s547_s8 }
  0x14   :  { %p554_p8 = por %p553_p7, %p552_p6 }
  0x16   :  { %p555_p9 = pnand %p554_p8, %p548_p5 }
  0x18   :  { %558 = shalt.err (!%p555_p9)
}
  0x19   :  { %24 = dma.hbm_to_vmem [thread:$0]  %s746_s0, 32, %s22_s29, [#allocation3]  }
  0x1a   :  { %s567_s11 = scalar_lea.vmem %s43_s7, 1024  ;;  %p572_p11 = scmp.lt.s32.totalorder %s43_s7, %s43_s7 }
  0x1b   :  { %p568_p10 = scmp.ne.s32.totalorder %s43_s7, %s567_s11  ;;  %p573_p12 = scmp.lt.s32.totalorder %s567_s11, %s567_s11 }
  0x1d   :  { %p574_p13 = por %p573_p12, %p572_p11 }
  0x1f   :  { %p575_p0 = pnand %p574_p13, %p568_p10 }
  0x21   :  { %578 = shalt.err (!%p575_p0)
}
  0x22   :  { %48 = dma.hbm_to_vmem [thread:$0]  %s748_s2, 1024, %s43_s7, [#allocation6], %s628_s24, %s628_s24, %s629_s25  }
  0x23   :  { %s632_s13 = smov [#allocation8]  }
  0x24   :  { %s58_s14 = sshll.u32 %s632_s13, 4  ;;  %s59_s14 = int_to_ptr.vmem [resolvable:$true] %s58_s14 }
  0x25   :  { %s587_s15 = scalar_lea.vmem %s59_s14, 512  ;;  %p592_p2 = scmp.lt.s32.totalorder %s59_s14, %s59_s14 }
  0x26   :  { %p588_p1 = scmp.ne.s32.totalorder %s59_s14, %s587_s15  ;;  %p593_p3 = scmp.lt.s32.totalorder %s587_s15, %s587_s15 }
  0x28   :  { %p594_p4 = por %p593_p3, %p592_p2 }
  0x2a   :  { %p595_p5 = pnand %p594_p4, %p588_p1 }
  0x2c   :  { %598 = shalt.err (!%p595_p5)
}
  0x2d   :  { %64 = dma.hbm_to_vmem [thread:$0]  %s751_s5, 512, %s59_s14, [#allocation9], %s628_s24, %s628_s24, %s629_s25  }
  0x2e   :  { %619 = dma.done.wait [#allocation3], 32  }
  0x2f   :  { %620 = vsyncadd [#allocation3], 4294967264 }
  0x30   :  { %621 = dma.done.wait [#allocation6], 2048  }
  0x31   :  { %622 = vsyncadd [#allocation6], 4294965248 }
  0x32   :  { %623 = dma.done.wait [#allocation9], 512  }
  0x33   :  { %624 = vsyncadd [#allocation9], 4294966784  ;;  %v633_v0 = vmov 0.0   ;;  %vm634_vm0 = vmmov 0   ;;  %v85_v1 = vld [vmem:[#allocation5 + $0x38] sm:$0xff]  ;;  %v84_v2 = vld [vmem:[#allocation5 + $0x30] sm:$0xff]  ;;  %v349_v38 = vlaneseq }
  0x34   :  { %446 = vmatprep.subr.mxu0 %v633_v0  ;;  %462 = vmatprep.mubr.msk.f32.mxu0 %vm634_vm0, %v633_v0  ;;  %v83_v3 = vld [vmem:[#allocation5 + $0x28] sm:$0xff]  ;;  %v167_v4 = vld [vmem:[#allocation7 + $0x38] sm:$0xff]  ;;  %v166_v5 = vld [vmem:[#allocation7 + $0x30] sm:$0xff]  ;;  %vm86_vm1 = vcmask 523264   ;;  %v635_v36 = vmov 1966171168  }
  0x35   :  { %465 = vmatprep.subr.mxu1 %v633_v0  ;;  %481 = vmatprep.mubr.msk.f32.mxu1 %vm634_vm0, %v633_v0  ;;  %v82_v6 = vld [vmem:[#allocation5 + $0x20] sm:$0xff]  ;;  %v165_v7 = vld [vmem:[#allocation7 + $0x28] sm:$0xff]  ;;  %v81_v8 = vld [vmem:[#allocation5 + $0x18] sm:$0xff]  ;;  %v347_v37 = vunpack.c.l.s4 %v635_v36  ;;  %v350_v40 = vshrl.u32 %v349_v38, 7 }
  0x36   :  { %447 = vmatpush3.msra.mxu0 %v85_v1  ;;  %466 = vmatpush3.msra.mxu1 %v167_v4  ;;  %v164_v9 = vld [vmem:[#allocation7 + $0x20] sm:$0xff]  ;;  %v80_v10 = vld [vmem:[#allocation5 + $0x10] sm:$0xff]  ;;  %v163_v11 = vld [vmem:[#allocation7 + $0x18] sm:$0xff] }
  0x37   :  { %448 = vmatprep.subr.mxu0 %v633_v0  ;;  %467 = vmatprep.subr.mxu1 %v633_v0  ;;  %v79_v12 = vld [vmem:[#allocation5 + $0x8] sm:$0xff]  ;;  %v162_v13 = vld [vmem:[#allocation7 + $0x10] sm:$0xff]  ;;  %v78_v14 = vld [vmem:[#allocation5] sm:$0xff]  ;;  %v348_v39 = vunpack.c.0.s8 %v347_v37  ;;  %v370_v45 = vsub.s32 0, %v350_v40 }
  0x38   :  { %449 = vmatpush3.msra.mxu0 %v84_v2  ;;  %468 = vmatpush3.msra.mxu1 %v166_v5  ;;  %v77_v15 = vld [vmem:[#allocation2] sm:$0x3]  ;;  %v161_v16 = vld [vmem:[#allocation7 + $0x8] sm:$0xff]  ;;  %v160_v17 = vld [vmem:[#allocation7] sm:$0xff] }
  0x39   :  { %450 = vmatprep.subr.mxu0 %v633_v0  ;;  %469 = vmatprep.subr.mxu1 %v633_v0  ;;  %v416_v28 = vld [vmem:[%s749_s3] ss:$0 sm:$0xff]  ;;  %v351_v41 = vsub.s32 %v348_v39, %v350_v40  ;;  %v341_v48 = vld [vmem:[#allocation8] sm:$0xff]  ;;  %v342_v49 = vld [vmem:[#allocation8 + $0x8] sm:$0xff]  ;;  %s636_s3 = smov [#allocation10]  }
  0x3a   :  { %451 = vmatpush3.msra.mxu0 %v83_v3  ;;  %470 = vmatpush3.msra.mxu1 %v165_v7  ;;  %v417_v30 = vld [vmem:[%s750_s4] ss:$0 sm:$0xff]  ;;  %v343_v50 = vld [vmem:[#allocation8 + $0x10] sm:$0xff]  ;;  %s399_s4 = sshll.u32 %s636_s3, 4  ;;  %s400_s4 = int_to_ptr.vmem [resolvable:$true] %s399_s4 }
  0x3b   :  { %452 = vmatprep.subr.mxu0 %v633_v0  ;;  %471 = vmatprep.subr.mxu1 %v633_v0  ;;  %v344_v53 = vld [vmem:[#allocation8 + $0x18] sm:$0xff]  ;;  %s599_s19 = scalar_lea.vmem %s400_s4, 1024  ;;  %p604_p7 = scmp.lt.s32.totalorder %s400_s4, %s400_s4 }
  0x3c   :  { %453 = vmatpush3.msra.mxu0 %v82_v6  ;;  %472 = vmatpush3.msra.mxu1 %v164_v9  ;;  %p600_p6 = scmp.ne.s32.totalorder %s400_s4, %s599_s19  ;;  %p605_p8 = scmp.lt.s32.totalorder %s599_s19, %s599_s19 }
  0x3d   :  { %454 = vmatprep.subr.mxu0 %v633_v0  ;;  %473 = vmatprep.subr.mxu1 %v633_v0 }
  0x3e   :  { %455 = vmatpush3.msra.mxu0 %v81_v8  ;;  %474 = vmatpush3.msra.mxu1 %v163_v11  ;;  %p606_p9 = por %p605_p8, %p604_p7 }
  0x3f   :  { %456 = vmatprep.subr.mxu0 %v633_v0  ;;  %475 = vmatprep.subr.mxu1 %v633_v0 }
  0x40   :  { %457 = vmatpush3.msra.mxu0 %v80_v10  ;;  %476 = vmatpush3.msra.mxu1 %v162_v13  ;;  %p607_p10 = pnand %p606_p9, %p600_p6 }
  0x41   :  { %458 = vmatprep.subr.mxu0 %v633_v0  ;;  %477 = vmatprep.subr.mxu1 %v633_v0 }
  0x42   :  { %459 = vmatpush3.msra.mxu0 %v79_v12  ;;  %478 = vmatpush3.msra.mxu1 %v161_v16 }
  0x43   :  { %460 = vmatprep.subr.mxu0 %v633_v0  ;;  %479 = vmatprep.subr.mxu1 %v633_v0 }
  0x44   :  { %461 = vmatpush3.msra.mxu0 %v78_v14  ;;  %480 = vmatpush3.msra.mxu1 %v160_v17 }
  0x45   :  { %463 = vmatmul.mubr.msk.f32.vlgmr.msra.gmra.mxu0 %vm86_vm1, %v77_v15  ;;  %484 = vmatprep.subr.mxu0 %v633_v0 }
  0x46   :  { %485 = vmatpush3.msra.mxu0 %v167_v4  ;;  %500 = vmatprep.mubr.msk.f32.mxu0 %vm634_vm0, %v633_v0 }
  0x47   :  { %486 = vmatprep.subr.mxu0 %v633_v0 }
  0x48   :  { %487 = vmatpush3.msra.mxu0 %v166_v5 }
  0x49   :  { %488 = vmatprep.subr.mxu0 %v633_v0 }
  0x4a   :  { %489 = vmatpush3.msra.mxu0 %v165_v7 }
  0x4b   :  { %490 = vmatprep.subr.mxu0 %v633_v0 }
  0x4c   :  { %491 = vmatpush3.msra.mxu0 %v164_v9 }
  0x4d   :  { %492 = vmatprep.subr.mxu0 %v633_v0 }
  0x4e   :  { %493 = vmatpush3.msra.mxu0 %v163_v11 }
  0x4f   :  { %494 = vmatprep.subr.mxu0 %v633_v0 }
  0x50   :  { %495 = vmatpush3.msra.mxu0 %v162_v13 }
  0x51   :  { %496 = vmatprep.subr.mxu0 %v633_v0 }
  0x52   :  { %497 = vmatpush3.msra.mxu0 %v161_v16 }
  0x53   :  { %498 = vmatprep.subr.mxu0 %v633_v0 }
  0x54   :  { %499 = vmatpush3.msra.mxu0 %v160_v17 }
 0x105   :  { %v156_v18 = vpop.f32.mrf.mxu0 }
 0x106   :  { %482 = vmatmul.mubr.msk.f32.vlgmr.msra.gmra.mxu1 %vm86_vm1, %v156_v18 }
 0x107   :  { %v464_v19 = vpop.f32.mrf.mxu0 }
 0x1c6   :  { %v237_v20 = vpop.f32.mrf.mxu1 }
 0x1c7   :  { %v241_v21 = vsub.f32 %v156_v18, %v237_v20 }
 0x1c8   :  { %v483_v22 = vpop.f32.mrf.mxu1 }
 0x1c9   :  { %v242_v23 = vmul.f32 %v241_v21, %v241_v21 }
 0x1cb   :  { %501 = vmatmul.mubr.msk.f32.vlgmr.msra.gmra.mxu0 %vm86_vm1, %v242_v23 }
 0x28b   :  { %v312_v24 = vpop.f32.mrf.mxu0 }
 0x28c   :  { %v313_v25 = vadd.f32 1e-05, %v312_v24 }
 0x28d   :  { %v502_v26 = vpop.f32.mrf.mxu0 }
 0x28e   :  { %513 = vrsqrt.f32 %v313_v25 }
 0x29b   :  { %v514_v27 = vpop.eup %513 }
 0x29c   :  { %v317_v29 = vmul.f32 %v514_v27, %v241_v21 }
 0x29e   :  { %v325_v31 = vmul.f32 %v416_v28, %v317_v29 }
 0x2a0   :  { %v333_v32 = vadd.f32 %v417_v30, %v325_v31 }
 0x2a2   :  { %v418_v33 = vmul.f32 -1.442695, %v333_v32 }
 0x2a4   :  { %515 = vpow2.f32 %v418_v33 }
 0x2b1   :  { %v516_v34 = vpop.eup %515 }
 0x2b2   :  { %v337_v35 = vadd.f32 1.0, %v516_v34 }
 0x2b4   :  { %517 = vrcp.f32 %v337_v35 }
 0x2c1   :  { %v518_v42 = vpop.eup %517 }
 0x2c2   :  { %v340_v43 = vadd.f32 1.0, %v518_v42 }
 0x2c4   :  { %v352_v44 = vrot.slane %v340_v43, %v351_v41 }
 0x2c6   :  { %v353_v46 = vcombine.high %v352_v44, %v352_v44  ;;  %v360_v47 = vrot.slane %v352_v44, %v351_v41 }
 0x2c8   :  { %v367_v51 = vrot.slane %v353_v46, %v351_v41  ;;  %v371_v52 = vrot.slane %v360_v47, %v370_v45 }
 0x2ca   :  { %v375_v54 = vrot.slane %v367_v51, %v370_v45  ;;  %v378_v55 = vmul.f32 %v371_v52, %v341_v48  ;;  %v379_v56 = vmul.f32 %v371_v52, %v342_v49  ;;  %v380_v57 = vmul.f32 %v371_v52, %v343_v50 }
 0x2cb   :  { %v381_v58 = vmul.f32 %v371_v52, %v344_v53 }
 0x2cc   :  { %v382_v59 = vmul.f32 %v375_v54, %v341_v48  ;;  %v383_v60 = vmul.f32 %v375_v54, %v342_v49  ;;  %v384_v61 = vmul.f32 %v375_v54, %v343_v50  ;;  %v385_v62 = vmul.f32 %v375_v54, %v344_v53  ;;  %386 = vst.msk [vmem:[#allocation10] sm:$0xff] %vm86_vm1, %v378_v55 }
 0x2cd   :  { %387 = vst.msk [vmem:[#allocation10 + $0x8] sm:$0xff] %vm86_vm1, %v379_v56  ;;  %388 = vst.msk [vmem:[#allocation10 + $0x10] sm:$0xff] %vm86_vm1, %v380_v57 }
 0x2ce   :  { %389 = vst.msk [vmem:[#allocation10 + $0x18] sm:$0xff] %vm86_vm1, %v381_v58  ;;  %390 = vst.msk [vmem:[#allocation10 + $0x20] sm:$0xff] %vm86_vm1, %v382_v59 }
 0x2cf   :  { %391 = vst.msk [vmem:[#allocation10 + $0x28] sm:$0xff] %vm86_vm1, %v383_v60  ;;  %392 = vst.msk [vmem:[#allocation10 + $0x30] sm:$0xff] %vm86_vm1, %v384_v61 }
 0x2d0   :  { %393 = vst.msk [vmem:[#allocation10 + $0x38] sm:$0xff] %vm86_vm1, %v385_v62 }
 0x2d1   :  { %610 = shalt.err (!%p607_p10)
}
 0x2d2   :  { %405 = dma.vmem_to_hbm [thread:$0]  %s400_s4, 1024, %s752_s6, [#allocation4], %s628_s24, %s628_s24, %s629_s25  }
 0x2d3   :  { %625 = dma.done.wait [#allocation4], 1024  }
 0x2d4   :  { %626 = vsyncadd [#allocation4], 4294966272 }
 0x2d5   :  { %409 = vsyncpa [#allocation3], 1 }
 0x2d6   :  { %410 = vsyncpa [#allocation6], 1 }
 0x2d7   :  { %411 = vsyncpa [#allocation9], 1 }
 0x2d8   :  { %412 = vsyncpa [#allocation4], 1 }

</bundles_post_ra>
